<compile_context>
chip_gen: v6e
topology: v6e:2x2x1
jax: 0.10.0
libtpu: 0.0.40
codegen_flags: <defaults>
</compile_context>

<pallas_src>
import jax
import jax.numpy as jnp
from jax.experimental import pallas as pl
from jax.experimental.pallas import tpu as pltpu


TOKENS_PER_STEP = 8  # sublane-aligned output tile; 8 row-gather DMAs in flight per step


def _gather_kernel(ids_ref, table_ref, out_ref, sem):
    """Gather TOKENS_PER_STEP embedding rows into the current output block.

    ids_ref   : SMEM [N_padded] int32   (scalar-prefetched flat token ids)
    table_ref : HBM  [V, H]             (memory_space=pl.ANY, manual DMA)
    out_ref   : VMEM [TOKENS_PER_STEP, H] output block for this grid step
    sem       : DMA semaphores, one per in-flight row copy
    """
    base = pl.program_id(0) * TOKENS_PER_STEP
    copies = []
    for r in range(TOKENS_PER_STEP):              # static, unrolled
        idx = ids_ref[base + r]                   # dynamic row index from SMEM
        cp = pltpu.make_async_copy(
            table_ref.at[pl.ds(idx, 1), :],       # one [1, H] row in HBM
            out_ref.at[pl.ds(r, 1), :],           # row r of the output tile
            sem.at[r],
        )
        cp.start()
        copies.append(cp)
    for cp in copies:
        cp.wait()


def embedding_lookup(ids: jax.Array, table: jax.Array) -> jax.Array:
    """ids: integer array [...]; table: [V, H]. Returns table[ids] with shape [..., H]."""
    orig_shape = ids.shape
    V, H = table.shape

    flat = ids.reshape(-1).astype(jnp.int32)
    n = flat.shape[0]
    n_pad = pl.cdiv(n, TOKENS_PER_STEP) * TOKENS_PER_STEP
    if n_pad != n:
        # Padded slots gather row 0 (always a valid index) and are sliced off below.
        flat = jnp.pad(flat, (0, n_pad - n))

    out = pl.pallas_call(
        _gather_kernel,
        out_shape=jax.ShapeDtypeStruct((n_pad, H), table.dtype),
        grid_spec=pltpu.PrefetchScalarGridSpec(
            num_scalar_prefetch=1,                      # flat ids -> SMEM
            grid=(n_pad // TOKENS_PER_STEP,),
            in_specs=[pl.BlockSpec(memory_space=pl.ANY)],   # table stays in HBM
            out_specs=pl.BlockSpec((TOKENS_PER_STEP, H),
                                   lambda t, ids: (t, 0)),
            scratch_shapes=[pltpu.SemaphoreType.DMA((TOKENS_PER_STEP,))],
        ),
        compiler_params=pltpu.CompilerParams(
            dimension_semantics=("parallel",),          # shard tiles across v7x's 2 TCs
        ),
    )(flat, table)

    return out[:n].reshape(*orig_shape, H)


def embedding_forward(input_ids: jax.Array,
                      feature_ids: jax.Array,
                      text_table: jax.Array,
                      feature_table: jax.Array):
    """Pallas equivalent of Embedding.forward -> (text_embeddings, feature_embeddings)."""
    text_embeddings = embedding_lookup(input_ids, text_table)
    feature_embeddings = embedding_lookup(feature_ids, feature_table)
    return text_embeddings, feature_embeddings


if __name__ == "__main__":
    # Small shapes consistent with the module: batch=2, seq=8, hidden=32.
    B, S, H = 2, 8, 32
    TEXT_VOCAB, FEATURE_VOCAB, PAD_ID = 64, 32, 0

    key = jax.random.PRNGKey(0)
    k1, k2, k3, k4 = jax.random.split(key, 4)

    text_table = jax.random.normal(k1, (TEXT_VOCAB, H), dtype=jnp.float32)
    feature_table = jax.random.normal(k2, (FEATURE_VOCAB, H), dtype=jnp.float32)
    # nn.Embedding(padding_idx=PAD_ID) zero-initializes the padding row.
    text_table = text_table.at[PAD_ID].set(0.0)
    feature_table = feature_table.at[PAD_ID].set(0.0)

    input_ids = jax.random.randint(k3, (B, S), 0, TEXT_VOCAB, dtype=jnp.int32)
    feature_ids = jax.random.randint(k4, (B, S), 0, FEATURE_VOCAB, dtype=jnp.int32)

    text_emb, feat_emb = embedding_forward(input_ids, feature_ids,
                                           text_table, feature_table)
    text_emb, feat_emb = jax.block_until_ready((text_emb, feat_emb))

    # Reference check in plain JAX (same semantics as nn.Embedding forward).
    ref_text = jnp.take(text_table, input_ids, axis=0)
    ref_feat = jnp.take(feature_table, feature_ids, axis=0)

    assert text_emb.shape == (B, S, H)
    assert feat_emb.shape == (B, S, H)
    assert jnp.array_equal(text_emb, ref_text)
    assert jnp.array_equal(feat_emb, ref_feat)

    print("KERNEL_OK")
</pallas_src>

<mosaic_0001>
module attributes {stable_mosaic.version = 11 : i64} {
  func.func @_gather_kernel(%arg0: i32, %arg1: memref<16xi32, #tpu.memory_space<smem>>, %arg2: memref<64x32xf32, #tpu.memory_space<any>>, %arg3: memref<8x32xf32, #tpu.memory_space<vmem>>, %arg4: memref<8x!tpu.dma_semaphore, #tpu.memory_space<semaphore_mem>>) attributes {dimension_semantics = [#tpu.dimension_semantics<parallel>], iteration_bounds = array<i64: 2>, scalar_prefetch = 1 : i64, scratch_operands = 1 : i64, tpu.core_type = #tpu.core_type<tc>, window_params = [{}, {transform_indices = @transform_1, window_bounds = array<i64: 8, 32>}]} {
    %c8_i32 = arith.constant 8 : i32
    %0 = arith.muli %arg0, %c8_i32 : i32
    %c0_i32 = arith.constant 0 : i32
    %1 = arith.addi %0, %c0_i32 : i32
    %2 = arith.index_cast %1 : i32 to index
    %3 = memref.load %arg1[%2] : memref<16xi32, #tpu.memory_space<smem>>
    %c0_i32_0 = arith.constant 0 : i32
    %c0_i32_1 = arith.constant 0 : i32
    %4 = tpu.memref_slice %arg2[%3, %c0_i32_1] : memref<64x32xf32, #tpu.memory_space<any>> -> memref<1x32xf32, #tpu.memory_space<any>>
    %c0_i32_2 = arith.constant 0 : i32
    %c0_i32_3 = arith.constant 0 : i32
    %5 = tpu.memref_slice %arg3[%c0_i32_2, %c0_i32_3] : memref<8x32xf32, #tpu.memory_space<vmem>> -> memref<1x32xf32, #tpu.memory_space<vmem>>
    %6 = tpu.memref_slice %arg4[%c0_i32_0] : memref<8x!tpu.dma_semaphore, #tpu.memory_space<semaphore_mem>> -> memref<1x!tpu.dma_semaphore, #tpu.memory_space<semaphore_mem>>
    %7 = tpu.memref_squeeze %6 : memref<1x!tpu.dma_semaphore, #tpu.memory_space<semaphore_mem>> -> memref<!tpu.dma_semaphore, #tpu.memory_space<semaphore_mem>>
    tpu.enqueue_dma source(%4 : memref<1x32xf32, #tpu.memory_space<any>>) target(%5 : memref<1x32xf32, #tpu.memory_space<vmem>>) target_semaphore(%7 : memref<!tpu.dma_semaphore, #tpu.memory_space<semaphore_mem>>)
    %c1_i32 = arith.constant 1 : i32
    %8 = arith.addi %0, %c1_i32 : i32
    %9 = arith.index_cast %8 : i32 to index
    %10 = memref.load %arg1[%9] : memref<16xi32, #tpu.memory_space<smem>>
    %c1_i32_4 = arith.constant 1 : i32
    %c0_i32_5 = arith.constant 0 : i32
    %11 = tpu.memref_slice %arg2[%10, %c0_i32_5] : memref<64x32xf32, #tpu.memory_space<any>> -> memref<1x32xf32, #tpu.memory_space<any>>
    %c1_i32_6 = arith.constant 1 : i32
    %c0_i32_7 = arith.constant 0 : i32
    %12 = tpu.memref_slice %arg3[%c1_i32_6, %c0_i32_7] : memref<8x32xf32, #tpu.memory_space<vmem>> -> memref<1x32xf32, #tpu.memory_space<vmem>>
    %13 = tpu.memref_slice %arg4[%c1_i32_4] : memref<8x!tpu.dma_semaphore, #tpu.memory_space<semaphore_mem>> -> memref<1x!tpu.dma_semaphore, #tpu.memory_space<semaphore_mem>>
    %14 = tpu.memref_squeeze %13 : memref<1x!tpu.dma_semaphore, #tpu.memory_space<semaphore_mem>> -> memref<!tpu.dma_semaphore, #tpu.memory_space<semaphore_mem>>
    tpu.enqueue_dma source(%11 : memref<1x32xf32, #tpu.memory_space<any>>) target(%12 : memref<1x32xf32, #tpu.memory_space<vmem>>) target_semaphore(%14 : memref<!tpu.dma_semaphore, #tpu.memory_space<semaphore_mem>>)
    %c2_i32 = arith.constant 2 : i32
    %15 = arith.addi %0, %c2_i32 : i32
    %16 = arith.index_cast %15 : i32 to index
    %17 = memref.load %arg1[%16] : memref<16xi32, #tpu.memory_space<smem>>
    %c2_i32_8 = arith.constant 2 : i32
    %c0_i32_9 = arith.constant 0 : i32
    %18 = tpu.memref_slice %arg2[%17, %c0_i32_9] : memref<64x32xf32, #tpu.memory_space<any>> -> memref<1x32xf32, #tpu.memory_space<any>>
    %c2_i32_10 = arith.constant 2 : i32
    %c0_i32_11 = arith.constant 0 : i32
    %19 = tpu.memref_slice %arg3[%c2_i32_10, %c0_i32_11] : memref<8x32xf32, #tpu.memory_space<vmem>> -> memref<1x32xf32, #tpu.memory_space<vmem>>
    %20 = tpu.memref_slice %arg4[%c2_i32_8] : memref<8x!tpu.dma_semaphore, #tpu.memory_space<semaphore_mem>> -> memref<1x!tpu.dma_semaphore, #tpu.memory_space<semaphore_mem>>
    %21 = tpu.memref_squeeze %20 : memref<1x!tpu.dma_semaphore, #tpu.memory_space<semaphore_mem>> -> memref<!tpu.dma_semaphore, #tpu.memory_space<semaphore_mem>>
    tpu.enqueue_dma source(%18 : memref<1x32xf32, #tpu.memory_space<any>>) target(%19 : memref<1x32xf32, #tpu.memory_space<vmem>>) target_semaphore(%21 : memref<!tpu.dma_semaphore, #tpu.memory_space<semaphore_mem>>)
    %c3_i32 = arith.constant 3 : i32
    %22 = arith.addi %0, %c3_i32 : i32
    %23 = arith.index_cast %22 : i32 to index
    %24 = memref.load %arg1[%23] : memref<16xi32, #tpu.memory_space<smem>>
    %c3_i32_12 = arith.constant 3 : i32
    %c0_i32_13 = arith.constant 0 : i32
    %25 = tpu.memref_slice %arg2[%24, %c0_i32_13] : memref<64x32xf32, #tpu.memory_space<any>> -> memref<1x32xf32, #tpu.memory_space<any>>
    %c3_i32_14 = arith.constant 3 : i32
    %c0_i32_15 = arith.constant 0 : i32
    %26 = tpu.memref_slice %arg3[%c3_i32_14, %c0_i32_15] : memref<8x32xf32, #tpu.memory_space<vmem>> -> memref<1x32xf32, #tpu.memory_space<vmem>>
    %27 = tpu.memref_slice %arg4[%c3_i32_12] : memref<8x!tpu.dma_semaphore, #tpu.memory_space<semaphore_mem>> -> memref<1x!tpu.dma_semaphore, #tpu.memory_space<semaphore_mem>>
    %28 = tpu.memref_squeeze %27 : memref<1x!tpu.dma_semaphore, #tpu.memory_space<semaphore_mem>> -> memref<!tpu.dma_semaphore, #tpu.memory_space<semaphore_mem>>
    tpu.enqueue_dma source(%25 : memref<1x32xf32, #tpu.memory_space<any>>) target(%26 : memref<1x32xf32, #tpu.memory_space<vmem>>) target_semaphore(%28 : memref<!tpu.dma_semaphore, #tpu.memory_space<semaphore_mem>>)
    %c4_i32 = arith.constant 4 : i32
    %29 = arith.addi %0, %c4_i32 : i32
    %30 = arith.index_cast %29 : i32 to index
    %31 = memref.load %arg1[%30] : memref<16xi32, #tpu.memory_space<smem>>
    %c4_i32_16 = arith.constant 4 : i32
    %c0_i32_17 = arith.constant 0 : i32
    %32 = tpu.memref_slice %arg2[%31, %c0_i32_17] : memref<64x32xf32, #tpu.memory_space<any>> -> memref<1x32xf32, #tpu.memory_space<any>>
    %c4_i32_18 = arith.constant 4 : i32
    %c0_i32_19 = arith.constant 0 : i32
    %33 = tpu.memref_slice %arg3[%c4_i32_18, %c0_i32_19] : memref<8x32xf32, #tpu.memory_space<vmem>> -> memref<1x32xf32, #tpu.memory_space<vmem>>
    %34 = tpu.memref_slice %arg4[%c4_i32_16] : memref<8x!tpu.dma_semaphore, #tpu.memory_space<semaphore_mem>> -> memref<1x!tpu.dma_semaphore, #tpu.memory_space<semaphore_mem>>
    %35 = tpu.memref_squeeze %34 : memref<1x!tpu.dma_semaphore, #tpu.memory_space<semaphore_mem>> -> memref<!tpu.dma_semaphore, #tpu.memory_space<semaphore_mem>>
    tpu.enqueue_dma source(%32 : memref<1x32xf32, #tpu.memory_space<any>>) target(%33 : memref<1x32xf32, #tpu.memory_space<vmem>>) target_semaphore(%35 : memref<!tpu.dma_semaphore, #tpu.memory_space<semaphore_mem>>)
    %c5_i32 = arith.constant 5 : i32
    %36 = arith.addi %0, %c5_i32 : i32
    %37 = arith.index_cast %36 : i32 to index
    %38 = memref.load %arg1[%37] : memref<16xi32, #tpu.memory_space<smem>>
    %c5_i32_20 = arith.constant 5 : i32
    %c0_i32_21 = arith.constant 0 : i32
    %39 = tpu.memref_slice %arg2[%38, %c0_i32_21] : memref<64x32xf32, #tpu.memory_space<any>> -> memref<1x32xf32, #tpu.memory_space<any>>
    %c5_i32_22 = arith.constant 5 : i32
    %c0_i32_23 = arith.constant 0 : i32
    %40 = tpu.memref_slice %arg3[%c5_i32_22, %c0_i32_23] : memref<8x32xf32, #tpu.memory_space<vmem>> -> memref<1x32xf32, #tpu.memory_space<vmem>>
    %41 = tpu.memref_slice %arg4[%c5_i32_20] : memref<8x!tpu.dma_semaphore, #tpu.memory_space<semaphore_mem>> -> memref<1x!tpu.dma_semaphore, #tpu.memory_space<semaphore_mem>>
    %42 = tpu.memref_squeeze %41 : memref<1x!tpu.dma_semaphore, #tpu.memory_space<semaphore_mem>> -> memref<!tpu.dma_semaphore, #tpu.memory_space<semaphore_mem>>
    tpu.enqueue_dma source(%39 : memref<1x32xf32, #tpu.memory_space<any>>) target(%40 : memref<1x32xf32, #tpu.memory_space<vmem>>) target_semaphore(%42 : memref<!tpu.dma_semaphore, #tpu.memory_space<semaphore_mem>>)
    %c6_i32 = arith.constant 6 : i32
    %43 = arith.addi %0, %c6_i32 : i32
    %44 = arith.index_cast %43 : i32 to index
    %45 = memref.load %arg1[%44] : memref<16xi32, #tpu.memory_space<smem>>
    %c6_i32_24 = arith.constant 6 : i32
    %c0_i32_25 = arith.constant 0 : i32
    %46 = tpu.memref_slice %arg2[%45, %c0_i32_25] : memref<64x32xf32, #tpu.memory_space<any>> -> memref<1x32xf32, #tpu.memory_space<any>>
    %c6_i32_26 = arith.constant 6 : i32
    %c0_i32_27 = arith.constant 0 : i32
    %47 = tpu.memref_slice %arg3[%c6_i32_26, %c0_i32_27] : memref<8x32xf32, #tpu.memory_space<vmem>> -> memref<1x32xf32, #tpu.memory_space<vmem>>
    %48 = tpu.memref_slice %arg4[%c6_i32_24] : memref<8x!tpu.dma_semaphore, #tpu.memory_space<semaphore_mem>> -> memref<1x!tpu.dma_semaphore, #tpu.memory_space<semaphore_mem>>
    %49 = tpu.memref_squeeze %48 : memref<1x!tpu.dma_semaphore, #tpu.memory_space<semaphore_mem>> -> memref<!tpu.dma_semaphore, #tpu.memory_space<semaphore_mem>>
    tpu.enqueue_dma source(%46 : memref<1x32xf32, #tpu.memory_space<any>>) target(%47 : memref<1x32xf32, #tpu.memory_space<vmem>>) target_semaphore(%49 : memref<!tpu.dma_semaphore, #tpu.memory_space<semaphore_mem>>)
    %c7_i32 = arith.constant 7 : i32
    %50 = arith.addi %0, %c7_i32 : i32
    %51 = arith.index_cast %50 : i32 to index
    %52 = memref.load %arg1[%51] : memref<16xi32, #tpu.memory_space<smem>>
    %c7_i32_28 = arith.constant 7 : i32
    %c0_i32_29 = arith.constant 0 : i32
    %53 = tpu.memref_slice %arg2[%52, %c0_i32_29] : memref<64x32xf32, #tpu.memory_space<any>> -> memref<1x32xf32, #tpu.memory_space<any>>
    %c7_i32_30 = arith.constant 7 : i32
    %c0_i32_31 = arith.constant 0 : i32
    %54 = tpu.memref_slice %arg3[%c7_i32_30, %c0_i32_31] : memref<8x32xf32, #tpu.memory_space<vmem>> -> memref<1x32xf32, #tpu.memory_space<vmem>>
    %55 = tpu.memref_slice %arg4[%c7_i32_28] : memref<8x!tpu.dma_semaphore, #tpu.memory_space<semaphore_mem>> -> memref<1x!tpu.dma_semaphore, #tpu.memory_space<semaphore_mem>>
    %56 = tpu.memref_squeeze %55 : memref<1x!tpu.dma_semaphore, #tpu.memory_space<semaphore_mem>> -> memref<!tpu.dma_semaphore, #tpu.memory_space<semaphore_mem>>
    tpu.enqueue_dma source(%53 : memref<1x32xf32, #tpu.memory_space<any>>) target(%54 : memref<1x32xf32, #tpu.memory_space<vmem>>) target_semaphore(%56 : memref<!tpu.dma_semaphore, #tpu.memory_space<semaphore_mem>>)
    %c0_i32_32 = arith.constant 0 : i32
    %c0_i32_33 = arith.constant 0 : i32
    %57 = tpu.memref_slice %arg2[%3, %c0_i32_33] : memref<64x32xf32, #tpu.memory_space<any>> -> memref<1x32xf32, #tpu.memory_space<any>>
    %c0_i32_34 = arith.constant 0 : i32
    %c0_i32_35 = arith.constant 0 : i32
    %58 = tpu.memref_slice %arg3[%c0_i32_34, %c0_i32_35] : memref<8x32xf32, #tpu.memory_space<vmem>> -> memref<1x32xf32, #tpu.memory_space<vmem>>
    %59 = tpu.memref_slice %arg4[%c0_i32_32] : memref<8x!tpu.dma_semaphore, #tpu.memory_space<semaphore_mem>> -> memref<1x!tpu.dma_semaphore, #tpu.memory_space<semaphore_mem>>
    %60 = tpu.memref_squeeze %59 : memref<1x!tpu.dma_semaphore, #tpu.memory_space<semaphore_mem>> -> memref<!tpu.dma_semaphore, #tpu.memory_space<semaphore_mem>>
    tpu.wait_dma2 semaphore(%60 : memref<!tpu.dma_semaphore, #tpu.memory_space<semaphore_mem>>) src(%57 : memref<1x32xf32, #tpu.memory_space<any>>) dst(%58 : memref<1x32xf32, #tpu.memory_space<vmem>>)
    %c1_i32_36 = arith.constant 1 : i32
    %c0_i32_37 = arith.constant 0 : i32
    %61 = tpu.memref_slice %arg2[%10, %c0_i32_37] : memref<64x32xf32, #tpu.memory_space<any>> -> memref<1x32xf32, #tpu.memory_space<any>>
    %c1_i32_38 = arith.constant 1 : i32
    %c0_i32_39 = arith.constant 0 : i32
    %62 = tpu.memref_slice %arg3[%c1_i32_38, %c0_i32_39] : memref<8x32xf32, #tpu.memory_space<vmem>> -> memref<1x32xf32, #tpu.memory_space<vmem>>
    %63 = tpu.memref_slice %arg4[%c1_i32_36] : memref<8x!tpu.dma_semaphore, #tpu.memory_space<semaphore_mem>> -> memref<1x!tpu.dma_semaphore, #tpu.memory_space<semaphore_mem>>
    %64 = tpu.memref_squeeze %63 : memref<1x!tpu.dma_semaphore, #tpu.memory_space<semaphore_mem>> -> memref<!tpu.dma_semaphore, #tpu.memory_space<semaphore_mem>>
    tpu.wait_dma2 semaphore(%64 : memref<!tpu.dma_semaphore, #tpu.memory_space<semaphore_mem>>) src(%61 : memref<1x32xf32, #tpu.memory_space<any>>) dst(%62 : memref<1x32xf32, #tpu.memory_space<vmem>>)
    %c2_i32_40 = arith.constant 2 : i32
    %c0_i32_41 = arith.constant 0 : i32
    %65 = tpu.memref_slice %arg2[%17, %c0_i32_41] : memref<64x32xf32, #tpu.memory_space<any>> -> memref<1x32xf32, #tpu.memory_space<any>>
    %c2_i32_42 = arith.constant 2 : i32
    %c0_i32_43 = arith.constant 0 : i32
    %66 = tpu.memref_slice %arg3[%c2_i32_42, %c0_i32_43] : memref<8x32xf32, #tpu.memory_space<vmem>> -> memref<1x32xf32, #tpu.memory_space<vmem>>
    %67 = tpu.memref_slice %arg4[%c2_i32_40] : memref<8x!tpu.dma_semaphore, #tpu.memory_space<semaphore_mem>> -> memref<1x!tpu.dma_semaphore, #tpu.memory_space<semaphore_mem>>
    %68 = tpu.memref_squeeze %67 : memref<1x!tpu.dma_semaphore, #tpu.memory_space<semaphore_mem>> -> memref<!tpu.dma_semaphore, #tpu.memory_space<semaphore_mem>>
    tpu.wait_dma2 semaphore(%68 : memref<!tpu.dma_semaphore, #tpu.memory_space<semaphore_mem>>) src(%65 : memref<1x32xf32, #tpu.memory_space<any>>) dst(%66 : memref<1x32xf32, #tpu.memory_space<vmem>>)
    %c3_i32_44 = arith.constant 3 : i32
    %c0_i32_45 = arith.constant 0 : i32
    %69 = tpu.memref_slice %arg2[%24, %c0_i32_45] : memref<64x32xf32, #tpu.memory_space<any>> -> memref<1x32xf32, #tpu.memory_space<any>>
    %c3_i32_46 = arith.constant 3 : i32
    %c0_i32_47 = arith.constant 0 : i32
    %70 = tpu.memref_slice %arg3[%c3_i32_46, %c0_i32_47] : memref<8x32xf32, #tpu.memory_space<vmem>> -> memref<1x32xf32, #tpu.memory_space<vmem>>
    %71 = tpu.memref_slice %arg4[%c3_i32_44] : memref<8x!tpu.dma_semaphore, #tpu.memory_space<semaphore_mem>> -> memref<1x!tpu.dma_semaphore, #tpu.memory_space<semaphore_mem>>
    %72 = tpu.memref_squeeze %71 : memref<1x!tpu.dma_semaphore, #tpu.memory_space<semaphore_mem>> -> memref<!tpu.dma_semaphore, #tpu.memory_space<semaphore_mem>>
    tpu.wait_dma2 semaphore(%72 : memref<!tpu.dma_semaphore, #tpu.memory_space<semaphore_mem>>) src(%69 : memref<1x32xf32, #tpu.memory_space<any>>) dst(%70 : memref<1x32xf32, #tpu.memory_space<vmem>>)
    %c4_i32_48 = arith.constant 4 : i32
    %c0_i32_49 = arith.constant 0 : i32
    %73 = tpu.memref_slice %arg2[%31, %c0_i32_49] : memref<64x32xf32, #tpu.memory_space<any>> -> memref<1x32xf32, #tpu.memory_space<any>>
    %c4_i32_50 = arith.constant 4 : i32
    %c0_i32_51 = arith.constant 0 : i32
    %74 = tpu.memref_slice %arg3[%c4_i32_50, %c0_i32_51] : memref<8x32xf32, #tpu.memory_space<vmem>> -> memref<1x32xf32, #tpu.memory_space<vmem>>
    %75 = tpu.memref_slice %arg4[%c4_i32_48] : memref<8x!tpu.dma_semaphore, #tpu.memory_space<semaphore_mem>> -> memref<1x!tpu.dma_semaphore, #tpu.memory_space<semaphore_mem>>
    %76 = tpu.memref_squeeze %75 : memref<1x!tpu.dma_semaphore, #tpu.memory_space<semaphore_mem>> -> memref<!tpu.dma_semaphore, #tpu.memory_space<semaphore_mem>>
    tpu.wait_dma2 semaphore(%76 : memref<!tpu.dma_semaphore, #tpu.memory_space<semaphore_mem>>) src(%73 : memref<1x32xf32, #tpu.memory_space<any>>) dst(%74 : memref<1x32xf32, #tpu.memory_space<vmem>>)
    %c5_i32_52 = arith.constant 5 : i32
    %c0_i32_53 = arith.constant 0 : i32
    %77 = tpu.memref_slice %arg2[%38, %c0_i32_53] : memref<64x32xf32, #tpu.memory_space<any>> -> memref<1x32xf32, #tpu.memory_space<any>>
    %c5_i32_54 = arith.constant 5 : i32
    %c0_i32_55 = arith.constant 0 : i32
    %78 = tpu.memref_slice %arg3[%c5_i32_54, %c0_i32_55] : memref<8x32xf32, #tpu.memory_space<vmem>> -> memref<1x32xf32, #tpu.memory_space<vmem>>
    %79 = tpu.memref_slice %arg4[%c5_i32_52] : memref<8x!tpu.dma_semaphore, #tpu.memory_space<semaphore_mem>> -> memref<1x!tpu.dma_semaphore, #tpu.memory_space<semaphore_mem>>
    %80 = tpu.memref_squeeze %79 : memref<1x!tpu.dma_semaphore, #tpu.memory_space<semaphore_mem>> -> memref<!tpu.dma_semaphore, #tpu.memory_space<semaphore_mem>>
    tpu.wait_dma2 semaphore(%80 : memref<!tpu.dma_semaphore, #tpu.memory_space<semaphore_mem>>) src(%77 : memref<1x32xf32, #tpu.memory_space<any>>) dst(%78 : memref<1x32xf32, #tpu.memory_space<vmem>>)
    %c6_i32_56 = arith.constant 6 : i32
    %c0_i32_57 = arith.constant 0 : i32
    %81 = tpu.memref_slice %arg2[%45, %c0_i32_57] : memref<64x32xf32, #tpu.memory_space<any>> -> memref<1x32xf32, #tpu.memory_space<any>>
    %c6_i32_58 = arith.constant 6 : i32
    %c0_i32_59 = arith.constant 0 : i32
    %82 = tpu.memref_slice %arg3[%c6_i32_58, %c0_i32_59] : memref<8x32xf32, #tpu.memory_space<vmem>> -> memref<1x32xf32, #tpu.memory_space<vmem>>
    %83 = tpu.memref_slice %arg4[%c6_i32_56] : memref<8x!tpu.dma_semaphore, #tpu.memory_space<semaphore_mem>> -> memref<1x!tpu.dma_semaphore, #tpu.memory_space<semaphore_mem>>
    %84 = tpu.memref_squeeze %83 : memref<1x!tpu.dma_semaphore, #tpu.memory_space<semaphore_mem>> -> memref<!tpu.dma_semaphore, #tpu.memory_space<semaphore_mem>>
    tpu.wait_dma2 semaphore(%84 : memref<!tpu.dma_semaphore, #tpu.memory_space<semaphore_mem>>) src(%81 : memref<1x32xf32, #tpu.memory_space<any>>) dst(%82 : memref<1x32xf32, #tpu.memory_space<vmem>>)
    %c7_i32_60 = arith.constant 7 : i32
    %c0_i32_61 = arith.constant 0 : i32
    %85 = tpu.memref_slice %arg2[%52, %c0_i32_61] : memref<64x32xf32, #tpu.memory_space<any>> -> memref<1x32xf32, #tpu.memory_space<any>>
    %c7_i32_62 = arith.constant 7 : i32
    %c0_i32_63 = arith.constant 0 : i32
    %86 = tpu.memref_slice %arg3[%c7_i32_62, %c0_i32_63] : memref<8x32xf32, #tpu.memory_space<vmem>> -> memref<1x32xf32, #tpu.memory_space<vmem>>
    %87 = tpu.memref_slice %arg4[%c7_i32_60] : memref<8x!tpu.dma_semaphore, #tpu.memory_space<semaphore_mem>> -> memref<1x!tpu.dma_semaphore, #tpu.memory_space<semaphore_mem>>
    %88 = tpu.memref_squeeze %87 : memref<1x!tpu.dma_semaphore, #tpu.memory_space<semaphore_mem>> -> memref<!tpu.dma_semaphore, #tpu.memory_space<semaphore_mem>>
    tpu.wait_dma2 semaphore(%88 : memref<!tpu.dma_semaphore, #tpu.memory_space<semaphore_mem>>) src(%85 : memref<1x32xf32, #tpu.memory_space<any>>) dst(%86 : memref<1x32xf32, #tpu.memory_space<vmem>>)
    return
  }
  func.func @transform_1(%arg0: i32, %arg1: memref<16xi32, #tpu.memory_space<smem>>) -> (i32, i32) {
    %c0_i32 = arith.constant 0 : i32
    %c0_i32_0 = arith.constant 0 : i32
    return %arg0, %c0_i32 : i32, i32
  }
}

</mosaic_0001>

<bundles_post_ra>
// kernel: tpu_custom_call.1
= control target key start
LH: loop header
LB: loop body
LE: loop exit
PB: predicated region body
PF: predicated region fallthrough
CT: control target
= control target key end

     0   :  { %s969_s0 = inlined_call_operand.vmem [shape: s32[16], index: 0, kind: input, shape index: {}]   ;;  %s970_s1 = inlined_call_operand.vmem [shape: f32[64,32], index: 1, kind: input, shape index: {}]   ;;  %s971_s2 = inlined_call_operand.hbm [shape: f32[16,32], index: 2, kind: output, shape index: {}]  }
   0x1   :  { %s7_s11 = sshll.u32 %s969_s0, 4  ;;  %s8_s11 = int_to_ptr.vmem [resolvable:$true] %s7_s11 }
   0x2   :  { %s747_s12 = scalar_lea.vmem %s8_s11, 16  ;;  %p752_p1 = scmp.lt.s32.totalorder %s8_s11, %s8_s11 }
   0x3   :  { %p748_p0 = scmp.ne.s32.totalorder %s8_s11, %s747_s12  ;;  %p753_p2 = scmp.lt.s32.totalorder %s747_s12, %s747_s12 }
   0x5   :  { %p754_p3 = por %p753_p2, %p752_p1 }
   0x7   :  { %p755_p4 = pnand %p754_p3, %p748_p0 }
   0x9   :  { %758 = shalt.err (!%p755_p4)  }
   0xa   :  { %s831_s13 = smov [#allocation4]  }
   0xb   :  { %10 = dma.vmem_to_smem %s8_s11, 16, %s831_s13, [#allocation3] }
   0xc   :  { %797 = dma.done.wait [#allocation3], 16 }
   0xd   :  { %798 = vsyncadd [#allocation3], 4294967280 }
   0xe   :  { %12 = sfence }
   0xf   :  { %13 = vsyncpa [#allocation6], 0 }
  0x10   :  { %15 = vsyncpa [#allocation6 + $0x1], 0  ;;  %s851_s14 = smov 0   ;;  %s853_s15 = smov 0  }
  0x11   :  { %s855_s0 = smov 0  }
  0x12 LB: > { %s684_s16 = sadd.s32 4294967295, %s829_s0   ;;  %s868_s17 = sadd.s32 1, %s829_s0   ;;  %s829_s0 = sphi %s855_s0, %s976_s0   ;;  %s825_s15 = sphi %s853_s15, %s975_s15   ;;  %s821_s14 = sphi %s851_s14, %s974_s14  }
  0x13   : > { %s24_s18 = ssub.s32 %s829_s0, %s868_s17  ;;  %s27_s19 = sadd.s32 1, %s825_s15 }
  0x14   : > { %p25_p5 = scmp.eq.s32.totalorder %s24_s18, 0  ;;  %p685_p6 = scmp.ne.s32.totalorder %s24_s18, 0 }
  0x15   : > { %p31_p7 = scmp.eq.s32.totalorder %s829_s0, 1  ;;  %p36_p8 = scmp.ne.s32.totalorder %s825_s15, %s821_s14 }
  0x16   : > { %s877_s20 = scalar_select %p25_p5, %s825_s15, %s27_s19  }
  0x17   : > { %p879_p9 = por %p685_p6, %p31_p7  ;;  %p37_p10 = scmp.eq.s32.totalorder %s684_s16, 1 }
  0x18   : > { %p686_p12 = scmp.ge.s32.totalorder %s829_s0, 2 }
  0x19   : > { %p883_p11 = por %p37_p10, %p36_p8  ;;  %s51_s23 = sand.u32 (!%p686_p12), 1, %s825_s15  }
  0x1a   : > { %46 = sbr.rel (%p686_p12) target bundleno = 145 (0x91), region = 12  ;;  %s890_s24 = sshll.u32 (!%p686_p12), %s829_s0, 3 }
  0x1b   : > { %s55_s25 = sld [smem:[#allocation4 + %s890_s24]] (!%p686_p12)  ;;  %s687_s26 = sshll.u32 (!%p686_p12), %s51_s23, 3 }
  0x1c   : > { %s898_s30 = scalar_lea.vmem (!%p686_p12), [#allocation5], %s687_s26 }
  0x21   : > { %s56_s29 = scalar_lea.vmem %s970_s1, %s55_s25 }
  0x22   : > { %v75_v0 = vld [vmem:[%s56_s29] sm:$0x1] }
  0x23   : > { %76 = vst [vmem:[%s898_s30] sm:$0x1] %v75_v0 }
  0x24   : > { %102 = vsyncadd [#allocation2], 16  ;;  %s103_s3 = sadd.s32 1, %s890_s24 }
  0x25   : > { %s104_s4 = sld [smem:[#allocation4 + %s103_s3]] }
  0x2b   : > { %s105_s7 = scalar_lea.vmem %s970_s1, %s104_s4 }
  0x2c   : > { %v126_v1 = vld [vmem:[%s105_s7] sm:$0x1] }
  0x2d   : > { %690 = vst [vmem:[%s898_s30 + $0x1] sm:$0x1] %v126_v1 }
  0x2e   : > { %153 = vsyncadd [#allocation2 + $0x1], 16  ;;  %s154_s8 = sadd.s32 2, %s890_s24 }
  0x2f   : > { %s155_s9 = sld [smem:[#allocation4 + %s154_s8]] }
  0x35   : > { %s156_s12 = scalar_lea.vmem %s970_s1, %s155_s9 }
  0x36   : > { %v177_v2 = vld [vmem:[%s156_s12] sm:$0x1] }
  0x37   : > { %692 = vst [vmem:[%s898_s30 + $0x2] sm:$0x1] %v177_v2 }
  0x38   : > { %204 = vsyncadd [#allocation2 + $0x2], 16  ;;  %s205_s13 = sadd.s32 3, %s890_s24 }
  0x39   : > { %s206_s16 = sld [smem:[#allocation4 + %s205_s13]] }
  0x3f   : > { %s207_s25 = scalar_lea.vmem %s970_s1, %s206_s16 }
  0x40   : > { %v228_v3 = vld [vmem:[%s207_s25] sm:$0x1] }
  0x41   : > { %694 = vst [vmem:[%s898_s30 + $0x3] sm:$0x1] %v228_v3 }
  0x42   : > { %255 = vsyncadd [#allocation2 + $0x3], 16  ;;  %s256_s26 = sadd.s32 4, %s890_s24 }
  0x43   : > { %s257_s27 = sld [smem:[#allocation4 + %s256_s26]] }
  0x49   : > { %s258_s3 = scalar_lea.vmem %s970_s1, %s257_s27 }
  0x4a   : > { %v279_v4 = vld [vmem:[%s258_s3] sm:$0x1] }
  0x4b   : > { %696 = vst [vmem:[%s898_s30 + $0x4] sm:$0x1] %v279_v4 }
  0x4c   : > { %306 = vsyncadd [#allocation2 + $0x4], 16  ;;  %s307_s4 = sadd.s32 5, %s890_s24 }
  0x4d   : > { %s308_s5 = sld [smem:[#allocation4 + %s307_s4]] }
  0x53   : > { %s309_s8 = scalar_lea.vmem %s970_s1, %s308_s5 }
  0x54   : > { %v330_v5 = vld [vmem:[%s309_s8] sm:$0x1] }
  0x55   : > { %698 = vst [vmem:[%s898_s30 + $0x5] sm:$0x1] %v330_v5 }
  0x56   : > { %357 = vsyncadd [#allocation2 + $0x5], 16  ;;  %s358_s9 = sadd.s32 6, %s890_s24 }
  0x57   : > { %s359_s10 = sld [smem:[#allocation4 + %s358_s9]] }
  0x5d   : > { %s360_s13 = scalar_lea.vmem %s970_s1, %s359_s10 }
  0x5e   : > { %v381_v6 = vld [vmem:[%s360_s13] sm:$0x1] }
  0x5f   : > { %700 = vst [vmem:[%s898_s30 + $0x6] sm:$0x1] %v381_v6 }
  0x60   : > { %408 = vsyncadd [#allocation2 + $0x6], 16  ;;  %s409_s16 = sadd.s32 7, %s890_s24 }
  0x61   : > { %s410_s18 = sld [smem:[#allocation4 + %s409_s16]] }
  0x67   : > { %s411_s26 = scalar_lea.vmem %s970_s1, %s410_s18 }
  0x68   : > { %v432_v7 = vld [vmem:[%s411_s26] sm:$0x1] }
  0x69   : > { %702 = vst [vmem:[%s898_s30 + $0x7] sm:$0x1] %v432_v7 }
  0x6a   : > { %459 = vsyncadd [#allocation2 + $0x7], 16 }
  0x6b   : > { %799 = dma.done.wait [#allocation2], 16 }
  0x6c   : > { %800 = vsyncadd [#allocation2], 4294967280 }
  0x6d   : > { %801 = dma.done.wait [#allocation2 + $0x1], 16 }
  0x6e   : > { %802 = vsyncadd [#allocation2 + $0x1], 4294967280 }
  0x6f   : > { %803 = dma.done.wait [#allocation2 + $0x2], 16 }
  0x70   : > { %804 = vsyncadd [#allocation2 + $0x2], 4294967280 }
  0x71   : > { %805 = dma.done.wait [#allocation2 + $0x3], 16 }
  0x72   : > { %806 = vsyncadd [#allocation2 + $0x3], 4294967280 }
  0x73   : > { %807 = dma.done.wait [#allocation2 + $0x4], 16 }
  0x74   : > { %808 = vsyncadd [#allocation2 + $0x4], 4294967280 }
  0x75   : > { %809 = dma.done.wait [#allocation2 + $0x5], 16 }
  0x76   : > { %810 = vsyncadd [#allocation2 + $0x5], 4294967280 }
  0x77   : > { %811 = dma.done.wait [#allocation2 + $0x6], 16 }
  0x78   : > { %812 = vsyncadd [#allocation2 + $0x6], 4294967280 }
  0x79   : > { %813 = dma.done.wait [#allocation2 + $0x7], 16 }
  0x7a   : > { %814 = vsyncadd [#allocation2 + $0x7], 4294967280  ;;  %s704_s24 = sshll.u32 %s829_s0, 7  ;;  %s491_s3 = sshll.u32 %s898_s30, 4  ;;  %s492_s3 = int_to_ptr.vmem [resolvable:$true] %s491_s3 }
  0x7b   : > { %s489_s29 = scalar_lea.hbm %s971_s2, %s704_s24  ;;  %s478_s4 = scalar_lea.sflag [#allocation6], %s51_s23 }
  0x7c   : > { %s759_s5 = scalar_lea.vmem %s492_s3, 128  ;;  %s832_s6 = smov [#allocation5]  }
  0x7d   : > { %p760_p13 = scmp.ne.s32.totalorder %s492_s3, %s759_s5  ;;  %s763_s7 = sshll.u32 %s832_s6, 4  ;;  %s764_s7 = int_to_ptr.vmem [resolvable:$false] %s763_s7 }
  0x7e   : > { %s765_s8 = scalar_lea.vmem %s764_s7, 256  ;;  %p766_p2 = scmp.lt.s32.totalorder %s492_s3, %s764_s7 }
  0x7f   : > { %p761_p0 = pnand %p760_p13, %p879_p9  ;;  %p767_p3 = scmp.lt.s32.totalorder %s765_s8, %s759_s5 }
  0x81   : > { %p762_p1 = pneg %p761_p0  ;;  %p768_p4 = por %p767_p3, %p766_p2 }
  0x83   : > { %p769_p5 = pnand %p768_p4, %p762_p1 }
  0x85   : > { %772 = shalt.err (!%p769_p5)
}
  0x86   : > { %s773_s9 = scalar_lea.hbm %s489_s29, 128  ;;  %s777_s10 = scalar_lea.hbm %s971_s2, 256 }
  0x87   : > { %p774_p6 = scmp.ne.s32.totalorder %s489_s29, %s773_s9  ;;  %p778_p10 = scmp.lt.s32.totalorder %s489_s29, %s971_s2 }
  0x88   : > { %p779_p12 = scmp.lt.s32.totalorder %s777_s10, %s773_s9 }
  0x89   : > { %p775_p7 = pnand %p774_p6, %p879_p9 }
  0x8a   : > { %p780_p13 = por %p779_p12, %p778_p10 }
  0x8b   : > { %p776_p8 = pneg %p775_p7 }
  0x8d   : > { %p781_p0 = pnand %p780_p13, %p776_p8 }
  0x8f   : > { %784 = shalt.err (!%p781_p0)
}
  0x90   : > { %715 = dma.vmem_to_hbm [thread:$0]  (%p879_p9), %s492_s3, 128, %s489_s29, %s478_s4  }
  0x91 PF: > { %p721_p1 = scmp.ge.s32.totalorder %s829_s0, 1  ;;  %s503_s13 = sand.u32 1, %s821_s14  }
  0x92   : > { %s504_s16 = scalar_lea.sflag [#allocation6], %s503_s13 }
  0x93   : > { %p718_p2 = pnand %p721_p1, %p883_p11 }
  0x95   : > { %p719_p3 = pneg %p718_p2 }
  0x97   : > { %816 = dma.done.wait (%p719_p3), %s504_s16, 128  }
  0x98   : > { %818 = vsyncadd (%p719_p3), %s504_s16, 4294967168  ;;  %p18_p4 = scmp.ge.s32.totalorder %s868_s17, 3   ;;  %s974_s14 = smov %s825_s15 }
  0x99   : > { %s975_s15 = smov %s877_s20  ;;  %s976_s0 = smov %s868_s17 }
  0x9a   :  { %20 = sbr.rel (!%p18_p4) target bundleno = 18 (0x12), region = 393 }
  0x9f   :  { %509 = vsyncpa [#allocation6], 1 }
  0xa0   :  { %511 = vsyncpa [#allocation6 + $0x1], 1 }
  0xa1   :  { %512 = vsyncmov [#allocation2] }
  0xa4   :  { %s513_s0 = vpop.sfrf %512 }
  0xa5   :  { %p707_p9 = scmp.ne.s32.totalorder %s513_s0, 0 }
  0xa7   :  { %517 = shalt.err (%p707_p9)  }
  0xa8   :  { %519 = vsyncmov [#allocation2 + $0x1] }
  0xab   :  { %s520_s21 = vpop.sfrf %519 }
  0xac   :  { %p708_p11 = scmp.ne.s32.totalorder %s520_s21, 0 }
  0xae   :  { %524 = shalt.err (%p708_p11)  }
  0xaf   :  { %526 = vsyncmov [#allocation2 + $0x2] }
  0xb2   :  { %s527_s22 = vpop.sfrf %526 }
  0xb3   :  { %p709_p5 = scmp.ne.s32.totalorder %s527_s22, 0 }
  0xb5   :  { %531 = shalt.err (%p709_p5)  }
  0xb6   :  { %533 = vsyncmov [#allocation2 + $0x3] }
  0xb9   :  { %s534_s18 = vpop.sfrf %533 }
  0xba   :  { %p710_p6 = scmp.ne.s32.totalorder %s534_s18, 0 }
  0xbc   :  { %538 = shalt.err (%p710_p6)  }
  0xbd   :  { %540 = vsyncmov [#allocation2 + $0x4] }
  0xc0   :  { %s541_s17 = vpop.sfrf %540 }
  0xc1   :  { %p711_p7 = scmp.ne.s32.totalorder %s541_s17, 0 }
  0xc3   :  { %545 = shalt.err (%p711_p7)  }
  0xc4   :  { %547 = vsyncmov [#allocation2 + $0x5] }
  0xc7   :  { %s548_s1 = vpop.sfrf %547 }
  0xc8   :  { %p712_p8 = scmp.ne.s32.totalorder %s548_s1, 0 }
  0xca   :  { %552 = shalt.err (%p712_p8)  }
  0xcb   :  { %554 = vsyncmov [#allocation2 + $0x6] }
  0xce   :  { %s555_s2 = vpop.sfrf %554 }
  0xcf   :  { %p713_p10 = scmp.ne.s32.totalorder %s555_s2, 0 }
  0xd1   :  { %559 = shalt.err (%p713_p10)  }
  0xd2   :  { %561 = vsyncmov [#allocation2 + $0x7] }
  0xd5   :  { %s562_s14 = vpop.sfrf %561 }
  0xd6   :  { %p714_p12 = scmp.ne.s32.totalorder %s562_s14, 0 }
  0xd8   :  { %566 = shalt.err (%p714_p12)  }

</bundles_post_ra>
